<compile_context>
chip_gen: v7x
topology: tpu7x:2x2x1
jax: 0.10.0
libtpu: 0.0.40
codegen_flags: <defaults>
</compile_context>

<pallas_src>
import functools

import jax
import jax.numpy as jnp
from jax.experimental import pallas as pl
from jax.experimental.pallas import tpu as pltpu

BN_EPS = 1e-5
_F32 = jnp.float32


# --------------------------------------------------------------------------- #
# Kernels
# --------------------------------------------------------------------------- #
def _affine_kernel_vpu(c_in, x_ref, wf_ref, bf_ref, o_ref):
    """y[co, :] = sum_ci Wf[co, ci] * x[ci, :] + bf[co] via unrolled VPU FMAs.

    Used only for tiny C (<= 4): the MXU would contract over K=C and be ~1%
    utilized, while C lane-dense FMAs keep the kernel HBM-bound.
    x_ref: (C, thw); wf_ref: (tc, C); bf_ref: (tc, 1); o_ref: (tc, thw).
    """
    tc = o_ref.shape[0]
    w = wf_ref[...].astype(_F32)                              # (tc, C)
    # Bias enters once via a lane broadcast; no full-tile add of zeros.
    acc = jnp.broadcast_to(bf_ref[...].astype(_F32), o_ref.shape)
    for ci in range(c_in):                                    # static unroll
        # stride-0 sublane-broadcast *load* of row ci (done by the load unit
        # rather than an in-register XLU/VALU broadcast per iteration).
        x_row = x_ref[pl.ds(ci, tc, stride=0), :].astype(_F32)  # (tc, thw)
        acc = acc + w[:, ci:ci + 1] * x_row
    o_ref[...] = acc.astype(o_ref.dtype)


def _affine_kernel_vpu_safe(c_in, x_ref, wf_ref, bf_ref, o_ref):
    """Fallback small-C body without stride-0 loads (previously proven path)."""
    x = x_ref[...].astype(_F32)
    w = wf_ref[...].astype(_F32)
    acc = jnp.broadcast_to(bf_ref[...].astype(_F32), o_ref.shape)
    for ci in range(c_in):
        acc = acc + w[:, ci:ci + 1] * x[ci:ci + 1, :]
    o_ref[...] = acc.astype(o_ref.dtype)


def _affine_kernel_mxu(x_ref, wf_ref, bf_ref, o_ref):
    """Same affine via one MXU matmul (K = C_in), f32 accumulation."""
    y = jnp.dot(wf_ref[...], x_ref[...], preferred_element_type=_F32)
    o_ref[...] = (y + bf_ref[...].astype(_F32)).astype(o_ref.dtype)


# --------------------------------------------------------------------------- #
# Tiling helpers
# --------------------------------------------------------------------------- #
def _vmem_capacity_bytes():
    cap = 64 << 20                      # conservative default = v7x physical
    try:
        cap = int(getattr(pltpu.get_tpu_info(), "vmem_capacity_bytes", cap))
    except Exception:
        pass
    return cap


def _choose_tiles(N, C, HW, tile_budget):
    """Pick (tc_out, n_cout_blocks, thw, n_hw_blocks) under a VMEM byte budget."""
    elem = 4                                            # f32 tiles
    tc = C if C <= 256 else 256                         # 8/128-aligned for big C
    cout_blocks = pl.cdiv(C, tc)

    # Per-step VMEM: double-buffered x (C,thw) + out (tc,thw) tiles, plus the
    # (worst case double-buffered) folded weight/bias.
    w_bytes = 2 * (tc * C + tc) * elem
    per_lane = (2 * C + 2 * tc) * elem
    thw_cap = max(tile_budget - w_bytes, 128 * per_lane) // per_lane
    thw_cap = max(128, (thw_cap // 128) * 128)

    if HW <= thw_cap:
        thw = HW            # full-extent block: ragged HW needs no pad at all
    else:
        thw = thw_cap       # multiple of 128; Pallas masks the ragged tail
    hw_blocks = pl.cdiv(HW, thw)

    # v7x has 2 TensorCores: make sure at least two parallel blocks exist.
    if N * hw_blocks * cout_blocks < 2 and HW >= 256:
        thw = pl.cdiv(pl.cdiv(HW, 2), 128) * 128
        hw_blocks = pl.cdiv(HW, thw)
    return tc, cout_blocks, thw, hw_blocks


# --------------------------------------------------------------------------- #
# Fused forward
# --------------------------------------------------------------------------- #
def fused_conv_bn_conv(x_nchw, w1, b1, gamma, beta, run_mean, run_var, w2, b2,
                       *, compute_dtype=None):
    """x_nchw: (N, C, H, W).  w1/w2: (C, C, 1, 1).  b1/b2/gamma/beta/stats: (C,)."""
    N, C, H, W = x_nchw.shape
    HW = H * W
    out_dtype = x_nchw.dtype

    # ---- Fold conv1 -> BN(eval) -> conv2 into one affine  y = Wf @ x + bf.
    w1_m = w1.reshape(C, C).astype(_F32)
    w2_m = w2.reshape(C, C).astype(_F32)
    scale = gamma.astype(_F32) / jnp.sqrt(run_var.astype(_F32) + BN_EPS)
    shift = beta.astype(_F32) - run_mean.astype(_F32) * scale
    wf = w2_m @ (scale[:, None] * w1_m)                       # (C_out, C_in)
    bf = (w2_m @ (scale * b1.astype(_F32) + shift)
          + b2.astype(_F32)).reshape(C, 1)

    # ---- Lane-dense layout: NCHW kept, H*W on lanes (free view, no copy).
    x3d = x_nchw.reshape(N, C, HW)
    if compute_dtype is not None and compute_dtype != x3d.dtype:
        # Optional bandwidth saving (e.g. bf16); accumulation stays f32.
        x3d = x3d.astype(compute_dtype)
        wf = wf.astype(compute_dtype)

    cap = _vmem_capacity_bytes()
    tile_budget = (cap * 2) // 5                       # ~40% of physical VMEM
    tc, cout_blocks, thw, hw_blocks = _choose_tiles(N, C, HW, tile_budget)
    grid = (N, hw_blocks, cout_blocks)
    vmem_limit = min((cap * 3) // 4, 96 << 20)

    def build(fancy):
        if C <= 4:      # MXU at K<=4 would be ~1% utilized -> stay on the VPU
            body = _affine_kernel_vpu if fancy else _affine_kernel_vpu_safe
            kernel = functools.partial(body, C)
        else:
            kernel = _affine_kernel_mxu

        # x block index is constant across the innermost C_out axis, so Pallas
        # skips the re-fetch and x is read from HBM exactly once.
        x_spec = pl.BlockSpec((None, C, thw), lambda n, j, co: (n, 0, j))
        if fancy and cout_blocks == 1:
            # Constant index map -> fetched exactly once; double-buffering the
            # folded weight/bias would only waste VMEM headroom.
            wf_spec = pl.BlockSpec((tc, C), lambda n, j, co: (co, 0),
                                   pipeline_mode=pl.Buffered(1))
            bf_spec = pl.BlockSpec((tc, 1), lambda n, j, co: (co, 0),
                                   pipeline_mode=pl.Buffered(1))
        else:
            wf_spec = pl.BlockSpec((tc, C), lambda n, j, co: (co, 0))
            bf_spec = pl.BlockSpec((tc, 1), lambda n, j, co: (co, 0))
        out_spec = pl.BlockSpec((None, tc, thw), lambda n, j, co: (n, co, j))

        return pl.pallas_call(
            kernel,
            out_shape=jax.ShapeDtypeStruct((N, C, HW), out_dtype),
            grid_spec=pltpu.PrefetchScalarGridSpec(
                num_scalar_prefetch=0,
                grid=grid,
                in_specs=[x_spec, wf_spec, bf_spec],
                out_specs=out_spec,
            ),
            compiler_params=pltpu.CompilerParams(
                dimension_semantics=("parallel", "parallel", "parallel"),
                vmem_limit_bytes=int(vmem_limit),
            ),
        )

    try:
        out3d = build(fancy=True)(x3d, wf, bf)
    except Exception:
        # Safety net: stride-0 broadcast loads / Buffered(1) are newer Mosaic
        # features; fall back to the previously-proven lowering path.
        out3d = build(fancy=False)(x3d, wf, bf)

    return out3d.reshape(N, C, H, W)


# --------------------------------------------------------------------------- #
# Pure-JAX reference (unfused, matches the PyTorch forward)
# --------------------------------------------------------------------------- #
def _reference(x_nchw, w1, b1, gamma, beta, run_mean, run_var, w2, b2):
    N, C, H, W = x_nchw.shape
    x = x_nchw.reshape(N, C, H * W)
    h = jnp.einsum('oc,ncl->nol', w1.reshape(C, C), x) + b1[None, :, None]
    h = ((h - run_mean[None, :, None])
         / jnp.sqrt(run_var[None, :, None] + BN_EPS)
         * gamma[None, :, None] + beta[None, :, None])
    y = jnp.einsum('oc,ncl->nol', w2.reshape(C, C), h) + b2[None, :, None]
    return y.reshape(N, C, H, W)


if __name__ == "__main__":
    key = jax.random.PRNGKey(0)
    N, C, H, W = 2, 4, 16, 16

    k_x, k_w1, k_b1, k_w2, k_b2 = jax.random.split(key, 5)

    x = jax.random.normal(k_x, (N, C, H, W), dtype=jnp.float32)

    # Conv parameter init (uniform in +/- 1/sqrt(fan_in), like PyTorch).
    bound = 1.0 / jnp.sqrt(jnp.float32(C * 1 * 1))
    w1 = jax.random.uniform(k_w1, (C, C, 1, 1), jnp.float32, -bound, bound)
    b1 = jax.random.uniform(k_b1, (C,), jnp.float32, -bound, bound)
    w2 = jax.random.uniform(k_w2, (C, C, 1, 1), jnp.float32, -bound, bound)
    b2 = jax.random.uniform(k_b2, (C,), jnp.float32, -bound, bound)

    # BatchNorm2d: default affine weight=1, bias=0; running stats = i/1000.
    gamma = jnp.ones((C,), jnp.float32)
    beta = jnp.zeros((C,), jnp.float32)
    run_mean = jnp.array([i / 1000.0 for i in range(C)], jnp.float32)
    run_var = jnp.array([i / 1000.0 for i in range(C)], jnp.float32)

    out = fused_conv_bn_conv(x, w1, b1, gamma, beta, run_mean, run_var, w2, b2)
    out = jax.block_until_ready(out)

    ref = _reference(x, w1, b1, gamma, beta, run_mean, run_var, w2, b2)
    assert out.shape == (N, C, H, W)
    # The algebraic fold reassociates f32 accumulation (and scale[0]~316 since
    # running_var[0]=0), so use a slightly looser but still-tight tolerance.
    assert jnp.allclose(out, ref, atol=1e-3, rtol=1e-3)

    print("KERNEL_OK")
</pallas_src>

<mosaic_0001>
module attributes {stable_mosaic.version = 11 : i64} {
  func.func @_affine_kernel_vpu(%arg0: i32, %arg1: i32, %arg2: i32, %arg3: memref<1x4x256xf32, #tpu.memory_space<vmem>>, %arg4: memref<4x4xf32, #tpu.memory_space<vmem>>, %arg5: memref<4x1xf32, #tpu.memory_space<vmem>>, %arg6: memref<1x4x256xf32, #tpu.memory_space<vmem>>) attributes {dimension_semantics = [#tpu.dimension_semantics<parallel>, #tpu.dimension_semantics<parallel>, #tpu.dimension_semantics<parallel>], iteration_bounds = array<i64: 2, 1, 1>, scalar_prefetch = 0 : i64, scratch_operands = 0 : i64, tpu.core_type = #tpu.core_type<tc>, window_params = [{transform_indices = @transform_0, window_bounds = array<i64: 1, 4, 256>}, {pipeline_mode = #tpu.pipeline_mode<synchronous>, transform_indices = @transform_1, window_bounds = array<i64: 4, 4>}, {pipeline_mode = #tpu.pipeline_mode<synchronous>, transform_indices = @transform_2, window_bounds = array<i64: 4, 1>}, {transform_indices = @transform_3, window_bounds = array<i64: 1, 4, 256>}]} {
    %c0 = arith.constant 0 : index
    %c0_0 = arith.constant 0 : index
    %0 = vector.load %arg4[%c0, %c0_0] : memref<4x4xf32, #tpu.memory_space<vmem>>, vector<4x4xf32>
    %c0_1 = arith.constant 0 : index
    %c0_2 = arith.constant 0 : index
    %1 = vector.load %arg5[%c0_1, %c0_2] : memref<4x1xf32, #tpu.memory_space<vmem>>, vector<4x1xf32>
    %2 = vector.shape_cast %1 : vector<4x1xf32> to vector<4x1xf32>
    %3 = vector.broadcast %2 : vector<4x1xf32> to vector<4x256xf32>
    %c0_3 = arith.constant 0 : index
    %c0_4 = arith.constant 0 : index
    %c0_5 = arith.constant 0 : index
    %4 = tpu.strided_load %arg3[%c0_3, %c0_4, %c0_5] {strides = array<i32: 1, 0, 1>} : memref<1x4x256xf32, #tpu.memory_space<vmem>>, vector<1x4x256xf32>
    %5 = vector.shape_cast %4 : vector<1x4x256xf32> to vector<4x256xf32>
    %6 = vector.extract_strided_slice %0 {offsets = [0, 0], sizes = [4, 1], strides = [1, 1]} : vector<4x4xf32> to vector<4x1xf32>
    %7 = vector.broadcast %6 : vector<4x1xf32> to vector<4x256xf32>
    %8 = arith.mulf %7, %5 : vector<4x256xf32>
    %9 = arith.addf %3, %8 : vector<4x256xf32>
    %c0_6 = arith.constant 0 : index
    %c1 = arith.constant 1 : index
    %c0_7 = arith.constant 0 : index
    %10 = tpu.strided_load %arg3[%c0_6, %c1, %c0_7] {strides = array<i32: 1, 0, 1>} : memref<1x4x256xf32, #tpu.memory_space<vmem>>, vector<1x4x256xf32>
    %11 = vector.shape_cast %10 : vector<1x4x256xf32> to vector<4x256xf32>
    %12 = vector.extract_strided_slice %0 {offsets = [0, 1], sizes = [4, 1], strides = [1, 1]} : vector<4x4xf32> to vector<4x1xf32>
    %13 = vector.broadcast %12 : vector<4x1xf32> to vector<4x256xf32>
    %14 = arith.mulf %13, %11 : vector<4x256xf32>
    %15 = arith.addf %9, %14 : vector<4x256xf32>
    %c0_8 = arith.constant 0 : index
    %c2 = arith.constant 2 : index
    %c0_9 = arith.constant 0 : index
    %16 = tpu.strided_load %arg3[%c0_8, %c2, %c0_9] {strides = array<i32: 1, 0, 1>} : memref<1x4x256xf32, #tpu.memory_space<vmem>>, vector<1x4x256xf32>
    %17 = vector.shape_cast %16 : vector<1x4x256xf32> to vector<4x256xf32>
    %18 = vector.extract_strided_slice %0 {offsets = [0, 2], sizes = [4, 1], strides = [1, 1]} : vector<4x4xf32> to vector<4x1xf32>
    %19 = vector.broadcast %18 : vector<4x1xf32> to vector<4x256xf32>
    %20 = arith.mulf %19, %17 : vector<4x256xf32>
    %21 = arith.addf %15, %20 : vector<4x256xf32>
    %c0_10 = arith.constant 0 : index
    %c3 = arith.constant 3 : index
    %c0_11 = arith.constant 0 : index
    %22 = tpu.strided_load %arg3[%c0_10, %c3, %c0_11] {strides = array<i32: 1, 0, 1>} : memref<1x4x256xf32, #tpu.memory_space<vmem>>, vector<1x4x256xf32>
    %23 = vector.shape_cast %22 : vector<1x4x256xf32> to vector<4x256xf32>
    %24 = vector.extract_strided_slice %0 {offsets = [0, 3], sizes = [4, 1], strides = [1, 1]} : vector<4x4xf32> to vector<4x1xf32>
    %25 = vector.broadcast %24 : vector<4x1xf32> to vector<4x256xf32>
    %26 = arith.mulf %25, %23 : vector<4x256xf32>
    %27 = arith.addf %21, %26 : vector<4x256xf32>
    %c0_12 = arith.constant 0 : index
    %c0_13 = arith.constant 0 : index
    %c0_14 = arith.constant 0 : index
    %28 = vector.load %arg6[%c0_12, %c0_13, %c0_14] : memref<1x4x256xf32, #tpu.memory_space<vmem>>, vector<1x4x256xf32>
    %29 = vector.shape_cast %28 : vector<1x4x256xf32> to vector<4x256xf32>
    %30 = vector.shape_cast %27 : vector<4x256xf32> to vector<1x4x256xf32>
    tpu.vector_store %arg6[%c0_12, %c0_13, %c0_14], %30 {strides = array<i32>} : memref<1x4x256xf32, #tpu.memory_space<vmem>>, vector<1x4x256xf32>,
    return
  }
  func.func @transform_0(%arg0: i32, %arg1: i32, %arg2: i32) -> (i32, i32, i32) {
    %c0_i32 = arith.constant 0 : i32
    %c0_i32_0 = arith.constant 0 : i32
    return %arg0, %c0_i32, %arg1 : i32, i32, i32
  }
  func.func @transform_1(%arg0: i32, %arg1: i32, %arg2: i32) -> (i32, i32) {
    %c0_i32 = arith.constant 0 : i32
    %c0_i32_0 = arith.constant 0 : i32
    return %arg2, %c0_i32 : i32, i32
  }
  func.func @transform_2(%arg0: i32, %arg1: i32, %arg2: i32) -> (i32, i32) {
    %c0_i32 = arith.constant 0 : i32
    %c0_i32_0 = arith.constant 0 : i32
    return %arg2, %c0_i32 : i32, i32
  }
  func.func @transform_3(%arg0: i32, %arg1: i32, %arg2: i32) -> (i32, i32, i32) {
    %c0_i32 = arith.constant 0 : i32
    return %arg0, %arg2, %arg1 : i32, i32, i32
  }
}

module attributes {stable_mosaic.version = 11 : i64} {
  func.func @_affine_kernel_vpu_safe(%arg0: i32, %arg1: i32, %arg2: i32, %arg3: memref<1x4x256xf32, #tpu.memory_space<vmem>>, %arg4: memref<4x4xf32, #tpu.memory_space<vmem>>, %arg5: memref<4x1xf32, #tpu.memory_space<vmem>>, %arg6: memref<1x4x256xf32, #tpu.memory_space<vmem>>) attributes {dimension_semantics = [#tpu.dimension_semantics<parallel>, #tpu.dimension_semantics<parallel>, #tpu.dimension_semantics<parallel>], iteration_bounds = array<i64: 2, 1, 1>, scalar_prefetch = 0 : i64, scratch_operands = 0 : i64, tpu.core_type = #tpu.core_type<tc>, window_params = [{transform_indices = @transform_0, window_bounds = array<i64: 1, 4, 256>}, {transform_indices = @transform_1, window_bounds = array<i64: 4, 4>}, {transform_indices = @transform_2, window_bounds = array<i64: 4, 1>}, {transform_indices = @transform_3, window_bounds = array<i64: 1, 4, 256>}]} {
    %c0 = arith.constant 0 : index
    %c0_0 = arith.constant 0 : index
    %c0_1 = arith.constant 0 : index
    %0 = vector.load %arg3[%c0, %c0_0, %c0_1] : memref<1x4x256xf32, #tpu.memory_space<vmem>>, vector<1x4x256xf32>
    %1 = vector.shape_cast %0 : vector<1x4x256xf32> to vector<4x256xf32>
    %c0_2 = arith.constant 0 : index
    %c0_3 = arith.constant 0 : index
    %2 = vector.load %arg4[%c0_2, %c0_3] : memref<4x4xf32, #tpu.memory_space<vmem>>, vector<4x4xf32>
    %c0_4 = arith.constant 0 : index
    %c0_5 = arith.constant 0 : index
    %3 = vector.load %arg5[%c0_4, %c0_5] : memref<4x1xf32, #tpu.memory_space<vmem>>, vector<4x1xf32>
    %4 = vector.shape_cast %3 : vector<4x1xf32> to vector<4x1xf32>
    %5 = vector.broadcast %4 : vector<4x1xf32> to vector<4x256xf32>
    %6 = vector.extract_strided_slice %2 {offsets = [0, 0], sizes = [4, 1], strides = [1, 1]} : vector<4x4xf32> to vector<4x1xf32>
    %7 = vector.extract_strided_slice %1 {offsets = [0, 0], sizes = [1, 256], strides = [1, 1]} : vector<4x256xf32> to vector<1x256xf32>
    %8 = vector.broadcast %6 : vector<4x1xf32> to vector<4x256xf32>
    %9 = vector.broadcast %7 : vector<1x256xf32> to vector<4x256xf32>
    %10 = arith.mulf %8, %9 : vector<4x256xf32>
    %11 = arith.addf %5, %10 : vector<4x256xf32>
    %12 = vector.extract_strided_slice %2 {offsets = [0, 1], sizes = [4, 1], strides = [1, 1]} : vector<4x4xf32> to vector<4x1xf32>
    %13 = vector.extract_strided_slice %1 {offsets = [1, 0], sizes = [1, 256], strides = [1, 1]} : vector<4x256xf32> to vector<1x256xf32>
    %14 = vector.broadcast %12 : vector<4x1xf32> to vector<4x256xf32>
    %15 = vector.broadcast %13 : vector<1x256xf32> to vector<4x256xf32>
    %16 = arith.mulf %14, %15 : vector<4x256xf32>
    %17 = arith.addf %11, %16 : vector<4x256xf32>
    %18 = vector.extract_strided_slice %2 {offsets = [0, 2], sizes = [4, 1], strides = [1, 1]} : vector<4x4xf32> to vector<4x1xf32>
    %19 = vector.extract_strided_slice %1 {offsets = [2, 0], sizes = [1, 256], strides = [1, 1]} : vector<4x256xf32> to vector<1x256xf32>
    %20 = vector.broadcast %18 : vector<4x1xf32> to vector<4x256xf32>
    %21 = vector.broadcast %19 : vector<1x256xf32> to vector<4x256xf32>
    %22 = arith.mulf %20, %21 : vector<4x256xf32>
    %23 = arith.addf %17, %22 : vector<4x256xf32>
    %24 = vector.extract_strided_slice %2 {offsets = [0, 3], sizes = [4, 1], strides = [1, 1]} : vector<4x4xf32> to vector<4x1xf32>
    %25 = vector.extract_strided_slice %1 {offsets = [3, 0], sizes = [1, 256], strides = [1, 1]} : vector<4x256xf32> to vector<1x256xf32>
    %26 = vector.broadcast %24 : vector<4x1xf32> to vector<4x256xf32>
    %27 = vector.broadcast %25 : vector<1x256xf32> to vector<4x256xf32>
    %28 = arith.mulf %26, %27 : vector<4x256xf32>
    %29 = arith.addf %23, %28 : vector<4x256xf32>
    %c0_6 = arith.constant 0 : index
    %c0_7 = arith.constant 0 : index
    %c0_8 = arith.constant 0 : index
    %30 = vector.load %arg6[%c0_6, %c0_7, %c0_8] : memref<1x4x256xf32, #tpu.memory_space<vmem>>, vector<1x4x256xf32>
    %31 = vector.shape_cast %30 : vector<1x4x256xf32> to vector<4x256xf32>
    %32 = vector.shape_cast %29 : vector<4x256xf32> to vector<1x4x256xf32>
    tpu.vector_store %arg6[%c0_6, %c0_7, %c0_8], %32 {strides = array<i32>} : memref<1x4x256xf32, #tpu.memory_space<vmem>>, vector<1x4x256xf32>,
    return
  }
  func.func @transform_0(%arg0: i32, %arg1: i32, %arg2: i32) -> (i32, i32, i32) {
    %c0_i32 = arith.constant 0 : i32
    %c0_i32_0 = arith.constant 0 : i32
    return %arg0, %c0_i32, %arg1 : i32, i32, i32
  }
  func.func @transform_1(%arg0: i32, %arg1: i32, %arg2: i32) -> (i32, i32) {
    %c0_i32 = arith.constant 0 : i32
    %c0_i32_0 = arith.constant 0 : i32
    return %arg2, %c0_i32 : i32, i32
  }
  func.func @transform_2(%arg0: i32, %arg1: i32, %arg2: i32) -> (i32, i32) {
    %c0_i32 = arith.constant 0 : i32
    %c0_i32_0 = arith.constant 0 : i32
    return %arg2, %c0_i32 : i32, i32
  }
  func.func @transform_3(%arg0: i32, %arg1: i32, %arg2: i32) -> (i32, i32, i32) {
    %c0_i32 = arith.constant 0 : i32
    return %arg0, %arg2, %arg1 : i32, i32, i32
  }
}

</mosaic_0001>

<bundles_post_ra>
// kernel: tpu_custom_call.1
= control target key start
LH: loop header
LB: loop body
LE: loop exit
PB: predicated region body
PF: predicated region fallthrough
CT: control target
= control target key end

     0   :  { %8 = vsyncpa [#allocation3], 0  ;;  %s918_s0 = inlined_call_operand.hbm [shape: f32[2,4,256], index: 0, kind: input, shape index: {}]   ;;  %s919_s1 = inlined_call_operand.vmem [shape: f32[4,4], index: 1, kind: input, shape index: {}]   ;;  %s920_s2 = inlined_call_operand.vmem [shape: f32[4,1], index: 2, kind: input, shape index: {}]   ;;  %s921_s3 = inlined_call_operand.hbm [shape: f32[2,4,256], index: 3, kind: output, shape index: {}]  }
   0x1   :  { %10 = vsyncpa [#allocation3 + $0x1], 0 }
   0x2   :  { %11 = vsyncpa [#allocation4], 0 }
   0x3   :  { %13 = vsyncpa [#allocation4 + $0x1], 0  ;;  %s736_s12 = smov 0   ;;  %s738_s13 = smov 0  }
   0x4   :  { %s740_s14 = smov 0   ;;  %s742_s15 = smov 0  }
   0x5   :  { %s744_s16 = smov 0   ;;  %s746_s17 = smov 0  }
   0x6 LB: > { %s507_s18 = sadd.s32 4294967295, %s708_s17   ;;  %s508_s19 = sadd.s32 4294967294, %s708_s17   ;;  %s708_s17 = sphi %s746_s17, %s19_s17   ;;  %s704_s16 = sphi %s744_s16, %s937_s16   ;;  %s700_s15 = sphi %s742_s15, %s936_s15   ;;  %s696_s14 = sphi %s740_s14, %s935_s14   ;;  %s692_s13 = sphi %s738_s13, %s934_s13   ;;  %s688_s12 = sphi %s736_s12, %s933_s12  }
   0x7   : > { %s38_s20 = sadd.s32 1, %s704_s16  ;;  %s47_s21 = sadd.s32 1, %s696_s14 }
   0x8   : > { %p40_p0 = scmp.ge.s32.totalorder %s38_s20, 2  ;;  %p54_p1 = scmp.ne.s32.totalorder %s696_s14, %s692_s13 }
   0x9   : > { %p55_p2 = scmp.eq.s32.totalorder %s708_s17, 0  ;;  %p60_p3 = scmp.ne.s32.totalorder %s692_s13, %s688_s12 }
   0xa   : > { %s939_s20 = smov (%p40_p0, %s38_s20), 0  ;;  %p61_p5 = scmp.eq.s32.totalorder %s507_s18, 0 }
   0xb   : > { %p777_p4 = por %p55_p2, %p54_p1  ;;  %s42_s23 = ssub.s32 %s704_s16, %s939_s20 }
   0xc   : > { %p140_p6 = scmp.eq.s32.totalorder %s507_s18, 1  ;;  %p45_p7 = scmp.eq.s32.totalorder %s42_s23, 0 }
   0xd   : > { %p783_p8 = por %p61_p5, %p60_p3  ;;  %p146_p10 = scmp.eq.s32.totalorder %s508_s19, 1 }
   0xe   : > { %p787_p9 = por %p140_p6, %p54_p1  ;;  %p538_p13 = scmp.lt.s32.totalorder %s708_s17, 2 }
   0xf   : > { %s792_s26 = scalar_select %p45_p7, %s696_s14, %s47_s21  }
  0x10   : > { %s925_s25 = scalar_select %p787_p9, 1, 0 }
  0x11   : > { %p794_p11 = por %p146_p10, %p60_p3  ;;  %s180_s28 = sand.u32 1, %s696_s14  }
  0x12   : > { %s513_s29 = sshll.u32 %s180_s28, 3  ;;  %s524_s30 = sshll.u32 %s704_s16, 7 }
  0x13   : > { %s926_s27 = scalar_select %p794_p11, 1, 0 }
  0x14   : > { %s805_s6 = scalar_lea.hbm %s918_s0, %s524_s30  ;;  %s184_s7 = scalar_lea.vmem [#allocation2], %s513_s29 }
  0x15   : > { %s194_s8 = sshll.u32 %s184_s7, 4  ;;  %p811_p0 = pnand %p538_p13, %p777_p4  ;;  %s807_s8 = int_to_ptr.vmem [resolvable:$true] %s194_s8 }
  0x16   : > { %s181_s10 = scalar_lea.sflag [#allocation3], %s180_s28  ;;  %s596_s11 = scalar_lea.hbm %s805_s6, 128 }
  0x17   : > { %p597_p3 = scmp.ne.s32.totalorder %s805_s6, %s596_s11  ;;  %p598_p5 = pneg %p811_p0 }
  0x18   : > { %s601_s21 = scalar_lea.hbm %s918_s0, 256  ;;  %p602_p4 = scmp.lt.u32.totalorder %s805_s6, %s918_s0 }
  0x19   : > { %p599_p6 = pnand %p598_p5, %p597_p3  ;;  %p603_p10 = scmp.lt.u32.totalorder %s601_s21, %s596_s11 }
  0x1a   : > { %p605_p12 = scmp.lt.u32.totalorder %s596_s11, %s805_s6 }
  0x1b   : > { %p600_p7 = pneg %p599_p6  ;;  %p604_p13 = por %p603_p10, %p602_p4 }
  0x1d   : > { %p606_p1 = por %p605_p12, %p604_p13 }
  0x1f   : > { %p607_p2 = pnand %p606_p1, %p600_p7 }
  0x21   : > { %610 = shalt.err (!%p607_p2)
}
  0x22   : > { %s611_s28 = scalar_lea.vmem %s807_s8, 128  ;;  %s710_s29 = smov [#allocation2]  }
  0x23   : > { %p612_p3 = scmp.ne.s32.totalorder %s807_s8, %s611_s28  ;;  %s616_s30 = sshll.u32 %s710_s29, 4  ;;  %s617_s30 = int_to_ptr.vmem [resolvable:$false] %s616_s30 }
  0x24   : > { %s618_s4 = scalar_lea.vmem %s617_s30, 256  ;;  %p619_p9 = scmp.lt.s32.totalorder %s807_s8, %s617_s30 }
  0x25   : > { %p614_p6 = pnand %p612_p3, %p598_p5  ;;  %p620_p4 = scmp.lt.s32.totalorder %s618_s4, %s611_s28 }
  0x27   : > { %p615_p11 = pneg %p614_p6  ;;  %p621_p10 = por %p620_p4, %p619_p9 }
  0x29   : > { %p622_p12 = pnand %p621_p10, %p615_p11 }
  0x2b   : > { %625 = shalt.err (!%p622_p12)
}
  0x2c   : > { %533 = dma.hbm_to_vmem [thread:$0]  (!%p811_p0), %s805_s6, 128, %s807_s8, %s181_s10  }
  0x2d   : > { %p928_p1 = scmp.lt.s32.totalorder %s708_s17, 3  ;;  %p929_p2 = scmp.ge.s32.totalorder %s708_s17, 1 }
  0x2f   : > { %p200_p5 = pnand %p929_p2, %p928_p1 }
  0x30   : > { %s847_s5 = sand.u32 (!%p200_p5), 1, %s692_s13  }
  0x31   : > { %203 = sbr.rel (%p200_p5) target bundleno = 216 (0xd8), region = 32  ;;  %s517_s7 = sshll.u32 (!%p200_p5), %s847_s5, 3 }
  0x32   : > { %s206_s11 = scalar_lea.sflag (!%p200_p5), [#allocation3], %s847_s5  ;;  %s209_s9 = scalar_lea.vmem (!%p200_p5), [#allocation2], %s517_s7 }
  0x38   : > { %679 = dma.done.wait (%p783_p8), %s206_s11, 128  }
  0x39   : > { %681 = vsyncadd (%p783_p8), %s206_s11, 4294967168  ;;  %v711_v0 = vmov 0   ;;  %v712_v1 = vmov 1   ;;  %v251_v2 = vld [vmem:[%s919_s1] sm:$0xf]  ;;  %v713_v4 = vmov 2   ;;  %v264_v6 = vlaneseq }
  0x3a   : > { %592 = vset.pattern.permute.xlu0 %v711_v0  ;;  %593 = vset.pattern.permute.xlu1 %v712_v1  ;;  %v252_v3 = vld [vmem:[%s920_s2] sm:$0xf]  ;;  %v714_v5 = vmov 3   ;;  %s525_s24 = sshll.u32 %s700_s15, 7  ;;  %s239_s19 = scalar_lea.vmem [#allocation5], %s517_s7 }
  0x3b   : > { %260 = vperm.xlu0 %592, %v251_v2   ;;  %287 = vperm.xlu1 %593, %v251_v2   ;;  %v265_v7 = vshrl.u32 %v264_v6, 7  ;;  %v250_v10 = vld [vmem:[%s209_s9] sm:$0xff]  ;;  %s388_s21 = sshll.u32 %s239_s19, 4  ;;  %s869_s28 = scalar_lea.hbm %s921_s3, %s525_s24  ;;  %s871_s21 = int_to_ptr.vmem [resolvable:$true] %s388_s21 }
  0x3c   : > { %s370_s29 = scalar_lea.sflag [#allocation4], %s847_s5  ;;  %s626_s30 = scalar_lea.vmem %s871_s21, 128 }
  0x3d   : > { %v266_v8 = vsub.s32 0, %v265_v7  ;;  %v270_v9 = vsub.s32 4, %v265_v7  ;;  %v292_v11 = vsub.s32 1, %v265_v7  ;;  %v296_v12 = vsub.s32 5, %v265_v7  ;;  %p627_p8 = scmp.ne.s32.totalorder %s871_s21, %s626_s30  ;;  %p930_p9 = scmp.ne.s32.totalorder %s925_s25, 0 }
  0x3e   : > { %v318_v13 = vsub.s32 2, %v265_v7  ;;  %v322_v14 = vsub.s32 6, %v265_v7  ;;  %v344_v21 = vsub.s32 3, %v265_v7  ;;  %v348_v22 = vsub.s32 7, %v265_v7  ;;  %s715_s15 = smov [#allocation5]  }
  0x3f   : > { %255 = vperm.xlu0 %592, %v252_v3   ;;  %594 = vset.pattern.permute.xlu1 %v713_v4  ;;  %v267_v15 = vrot.slane %v250_v10, %v266_v8  ;;  %v271_v16 = vrot.slane %v250_v10, %v270_v9  ;;  %v293_v17 = vrot.slane %v250_v10, %v292_v11  ;;  %p628_p11 = pnand %p627_p8, %p930_p9  ;;  %s630_s4 = sshll.u32 %s715_s15, 4  ;;  %s631_s4 = int_to_ptr.vmem [resolvable:$false] %s630_s4 }
  0x40   : > { %313 = vperm.xlu1 %594, %v251_v2   ;;  %v297_v18 = vrot.slane %v250_v10, %v296_v12  ;;  %v319_v19 = vrot.slane %v250_v10, %v318_v13  ;;  %v323_v20 = vrot.slane %v250_v10, %v322_v14  ;;  %v345_v31 = vrot.slane %v250_v10, %v344_v21  ;;  %s632_s7 = scalar_lea.vmem %s631_s4, 256  ;;  %p633_p7 = scmp.lt.s32.totalorder %s871_s21, %s631_s4 }
  0x41   : > { %v277_v23 = vrot.slane %v267_v15, %v266_v8  ;;  %v281_v24 = vrot.slane %v271_v16, %v266_v8  ;;  %v303_v27 = vrot.slane %v293_v17, %v292_v11  ;;  %v349_v32 = vrot.slane %v250_v10, %v348_v22  ;;  %p629_p0 = pneg %p628_p11  ;;  %p634_p13 = scmp.lt.s32.totalorder %s632_s7, %s626_s30 }
  0x42   : > { %v307_v28 = vrot.slane %v297_v18, %v292_v11  ;;  %v329_v29 = vrot.slane %v319_v19, %v318_v13  ;;  %v333_v30 = vrot.slane %v323_v20, %v318_v13  ;;  %v355_v43 = vrot.slane %v345_v31, %v344_v21 }
  0x43   : > { %595 = vset.pattern.permute.xlu0 %v714_v5  ;;  %v359_v44 = vrot.slane %v349_v32, %v344_v21  ;;  %p635_p3 = por %p634_p13, %p633_p7 }
  0x44   : > { %339 = vperm.xlu0 %595, %v251_v2  }
  0x45   : > { %p636_p6 = pnand %p635_p3, %p629_p0 }
  0xba   : > { %v261_v25 = vpop.permute.xlu0 %260  ;;  %v288_v26 = vpop.permute.xlu1 %287 }
  0xbb   : > { %v282_v33 = vmul.f32 %v277_v23, %v261_v25  ;;  %v283_v34 = vmul.f32 %v281_v24, %v261_v25  ;;  %v308_v36 = vmul.f32 %v303_v27, %v288_v26  ;;  %v309_v37 = vmul.f32 %v307_v28, %v288_v26 }
  0xbe   : > { %v256_v35 = vpop.permute.xlu0 %255 }
  0xbf   : > { %v284_v38 = vadd.f32 %v282_v33, %v256_v35  ;;  %v285_v39 = vadd.f32 %v283_v34, %v256_v35  ;;  %v314_v40 = vpop.permute.xlu1 %313 }
  0xc0   : > { %v334_v41 = vmul.f32 %v329_v29, %v314_v40  ;;  %v335_v42 = vmul.f32 %v333_v30, %v314_v40 }
  0xc1   : > { %v310_v45 = vadd.f32 %v308_v36, %v284_v38  ;;  %v311_v46 = vadd.f32 %v309_v37, %v285_v39 }
  0xc3   : > { %v336_v47 = vadd.f32 %v334_v41, %v310_v45  ;;  %v337_v48 = vadd.f32 %v335_v42, %v311_v46  ;;  %v340_v49 = vpop.permute.xlu0 %339 }
  0xc4   : > { %v360_v50 = vmul.f32 %v355_v43, %v340_v49  ;;  %v361_v51 = vmul.f32 %v359_v44, %v340_v49 }
  0xc6   : > { %v362_v52 = vadd.f32 %v360_v50, %v336_v47  ;;  %v363_v53 = vadd.f32 %v361_v51, %v337_v48 }
  0xc8   : > { %v366_v54 = vcombine.low %v362_v52, %v363_v53 }
  0xca   : > { %368 = vst [vmem:[%s239_s19] sm:$0xff] %v366_v54 }
  0xcb   : > { %639 = shalt.err (!%p636_p6)
}
  0xcc   : > { %s640_s5 = scalar_lea.hbm %s869_s28, 128  ;;  %s644_s6 = scalar_lea.hbm %s921_s3, 256 }
  0xcd   : > { %p641_p4 = scmp.ne.s32.totalorder %s869_s28, %s640_s5  ;;  %p645_p1 = scmp.lt.u32.totalorder %s869_s28, %s921_s3 }
  0xce   : > { %p646_p2 = scmp.lt.u32.totalorder %s644_s6, %s640_s5  ;;  %p648_p8 = scmp.lt.u32.totalorder %s640_s5, %s869_s28 }
  0xcf   : > { %p642_p10 = pnand %p641_p4, %p930_p9 }
  0xd0   : > { %p647_p5 = por %p646_p2, %p645_p1 }
  0xd1   : > { %p643_p12 = pneg %p642_p10 }
  0xd2   : > { %p649_p11 = por %p648_p8, %p647_p5 }
  0xd4   : > { %p650_p0 = pnand %p649_p11, %p643_p12 }
  0xd6   : > { %653 = shalt.err (!%p650_p0)
}
  0xd7   : > { %528 = dma.vmem_to_hbm [thread:$0]  (%p930_p9), %s871_s21, 128, %s869_s28, %s370_s29  }
  0xd8 PF: > { %s400_s18 = sand.u32 1, %s688_s12   ;;  %p931_p7 = scmp.ne.s32.totalorder %s926_s27, 0 }
  0xd9   : > { %p932_p13 = scmp.ge.s32.totalorder %s708_s17, 2  ;;  %s401_s24 = scalar_lea.sflag [#allocation4], %s400_s18 }
  0xdb   : > { %p535_p3 = pnand %p932_p13, %p931_p7 }
  0xdd   : > { %683 = dma.done.wait (!%p535_p3), %s401_s24, 128  }
  0xde   : > { %685 = vsyncadd (!%p535_p3), %s401_s24, 4294967168  ;;  %s19_s17 = sadd.s32 1, %s708_s17   ;;  %s933_s12 = smov %s692_s13 }
  0xdf   : > { %p16_p6 = scmp.ge.s32.totalorder %s19_s17, 4   ;;  %s934_s13 = smov %s696_s14 }
  0xe0   : > { %s935_s14 = smov %s792_s26  ;;  %s936_s15 = smov %s704_s16 }
  0xe1   : > { %s937_s16 = smov %s939_s20  ;;  %18 = sbr.rel (!%p16_p6) target bundleno = 6 (0x6), region = 83 }
  0xe8   :  { %406 = vsyncpa [#allocation3], 1 }
  0xe9   :  { %408 = vsyncpa [#allocation3 + $0x1], 1 }
  0xea   :  { %409 = vsyncpa [#allocation4], 1 }
  0xeb   :  { %411 = vsyncpa [#allocation4 + $0x1], 1 }

</bundles_post_ra>
